<compile_context>
chip_gen: v5e
topology: v5e:2x2
jax: 0.10.0
libtpu: 0.0.40
codegen_flags: <defaults>
</compile_context>

<pallas_src>
import jax
import jax.numpy as jnp
from jax.experimental import pallas as pl
from jax.experimental.pallas import tpu as pltpu


# --------------------------------------------------------------------------- #
# Kernel 1: pooled branch (phi & g) — fused 1x1 conv + 2x2 maxpool, per batch
# --------------------------------------------------------------------------- #
def _pooled_branch_kernel(x4_ref, pgw_ref, pgb_ref, g_out_ref, phit_out_ref):
    # x4_ref : (1, 4, N2, C) bf16 — the four 2x2-window slabs
    # pgw_ref: (C, 2Cp) bf16     — [:, :Cp] = g weight, [:, Cp:] = phi weight
    # pgb_ref: (1, 2Cp) f32
    w = pgw_ref[...]

    def mm(k):  # (N2, C) bf16 @ (C, 2Cp) bf16 -> (N2, 2Cp) f32
        return jnp.dot(x4_ref[0, k], w, preferred_element_type=jnp.float32)

    m01 = jnp.maximum(mm(0), mm(1))
    m23 = jnp.maximum(mm(2), mm(3))
    # per-channel bias is constant under the max, so add it after.
    pooled = jnp.maximum(m01, m23) + pgb_ref[...]            # (N2, 2Cp) f32

    cp = g_out_ref.shape[-1]
    g_out_ref[0] = pooled[:, :cp].astype(g_out_ref.dtype)            # (N2, Cp)
    # one once-per-batch XLU transpose so the hot loop gets a clean (K,N) operand
    phit_out_ref[0] = pooled[:, cp:].T.astype(phit_out_ref.dtype)    # (Cp, N2)


# --------------------------------------------------------------------------- #
# Kernel 2: main non-local kernel — theta, attention, W conv, BN, residual
# --------------------------------------------------------------------------- #
def _nonlocal_kernel(x_ref, phit_ref, g_ref,
                     thw_ref, thb_ref,
                     ww_ref, wb_ref,
                     bns_ref, bnt_ref,
                     o_ref):
    x = x_ref[0]                                             # (TILE_N, C) f32
    x_bf = x.astype(jnp.bfloat16)

    # theta(x): 1x1 conv C -> Cp
    theta = (jnp.dot(x_bf, thw_ref[...], preferred_element_type=jnp.float32)
             + thb_ref[...])                                 # (TILE_N, Cp) f32

    # f = theta @ phi^T — clean (M,K)@(K,N) MXU matmul
    f = jnp.dot(theta.astype(jnp.bfloat16), phit_ref[0],
                preferred_element_type=jnp.float32)          # (TILE_N, N2) f32

    # online-softmax style, normalization deferred past the g matmul:
    #   e = exp(f - max)  (bf16, EUP)
    #   y = (e @ g) * 1/sum(e)
    m = jnp.max(f, axis=-1, keepdims=True)
    e = jnp.exp((f - m).astype(jnp.bfloat16))                # (TILE_N, N2) bf16
    denom = jnp.sum(e, axis=-1, keepdims=True,
                    dtype=jnp.float32)                       # (TILE_N, 1) f32
    y_un = jnp.dot(e, g_ref[0],
                   preferred_element_type=jnp.float32)       # (TILE_N, Cp) f32
    inv = pl.reciprocal(denom, approx=True)
    y = (y_un * inv).astype(jnp.bfloat16)                    # normalize on Cp, not N2

    # W: 1x1 conv Cp -> C, BatchNorm folded to scale/shift, exact f32 residual
    wy = (jnp.dot(y, ww_ref[...], preferred_element_type=jnp.float32)
          + wb_ref[...])
    o_ref[0] = (wy * bns_ref[...] + bnt_ref[...] + x).astype(o_ref.dtype)


# --------------------------------------------------------------------------- #
# Wrapper
# --------------------------------------------------------------------------- #
def nonlocal_block_pallas(x_nchw, params, eps=1e-5, max_tile_n=1024,
                          out_dtype=jnp.float32):
    B, C, H, W = x_nchw.shape
    Cp = params["theta_w"].shape[0]
    assert H % 2 == 0 and W % 2 == 0  # TODO(synk): odd H/W (MaxPool2d floor) unsupported
    N = H * W
    N2 = (H // 2) * (W // 2)

    # ---- chip-aware sizing --------------------------------------------------
    try:
        vmem_cap = int(pltpu.get_tpu_info().vmem_capacity_bytes)
    except Exception:                                        # interpret/CPU fallback
        vmem_cap = 64 * 1024 * 1024

    def per_tile_bytes(t):
        # f (f32) + e (bf16) + x/out pipeline double buffers + theta/y temporaries
        return t * N2 * 6 + 4 * t * C * 4 + 4 * t * Cp * 4

    budget = max(2 * 1024 * 1024, int(0.35 * vmem_cap))
    div8 = [t for t in range(8, min(N, max_tile_n) + 1, 8) if N % t == 0]
    if div8:
        fitting = [t for t in div8 if per_tile_bytes(t) <= budget]
        tile_n = max(fitting) if fitting else min(div8)
    else:
        # only hit for very small N (e.g. H=W=2); footprint is trivially small
        tile_n = N  # TODO(synk): pad N to a multiple of 8 + mask for odd large N
    n_tiles = N // tile_n

    # ---- layout glue (no compute) -------------------------------------------
    # TODO(synk): the NCHW<->NHWC transposes and the x4 duplicate are extra HBM
    # passes; keep the surrounding model NHWC / fuse with the producer to drop them.
    x_nhwc = jnp.transpose(x_nchw, (0, 2, 3, 1)).astype(jnp.float32)   # (B,H,W,C)
    x_flat = x_nhwc.reshape(B, N, C)                                   # (B,N,C) f32
    x4 = (x_nhwc.reshape(B, H // 2, 2, W // 2, 2, C)
          .transpose(0, 2, 4, 1, 3, 5)
          .reshape(B, 4, N2, C)).astype(jnp.bfloat16)                  # (B,4,N2,C)

    # ---- parameter prep: MXU operands bf16, biases / BN affine f32 ----------
    th_w = params["theta_w"].T.astype(jnp.bfloat16)          # (C, Cp)
    th_b = params["theta_b"].reshape(1, Cp).astype(jnp.float32)
    w_w = params["W_w"].T.astype(jnp.bfloat16)               # (Cp, C)
    w_b = params["W_b"].reshape(1, C).astype(jnp.float32)
    # fused pooled-branch weight: columns [:Cp] = g, [Cp:] = phi
    pg_w = jnp.concatenate([params["g_w"].T, params["phi_w"].T],
                           axis=1).astype(jnp.bfloat16)      # (C, 2Cp)
    pg_b = jnp.concatenate([params["g_b"], params["phi_b"]]
                           ).reshape(1, 2 * Cp).astype(jnp.float32)

    bn_scale = (params["bn_gamma"] /
                jnp.sqrt(params["bn_var"] + eps)).astype(jnp.float32)
    bn_shift = (params["bn_beta"] -
                params["bn_mean"] * bn_scale).astype(jnp.float32)
    bn_scale = bn_scale.reshape(1, C)
    bn_shift = bn_shift.reshape(1, C)

    # ---- call 1: pooled branch (phi^T, g) per batch --------------------------
    build_flops = B * 4 * 2 * N2 * C * (2 * Cp)
    build_bytes = (x4.size * 2 + 2 * B * N2 * Cp * 2
                   + pg_w.size * 2 + pg_b.size * 4)
    build_est = (2 * 4 * N2 * C * 2            # x4 double-buffered bf16
                 + 4 * N2 * Cp * 2 * 2         # two bf16 outputs, double-buffered
                 + 6 * N2 * 2 * Cp * 4         # f32 temporaries
                 + pg_w.size * 2 + pg_b.size * 4 + (2 << 20))
    build_vmem = min(int(vmem_cap * 0.9), max(32 * 1024 * 1024, build_est))

    g_x, phi_t = pl.pallas_call(
        _pooled_branch_kernel,
        out_shape=(jax.ShapeDtypeStruct((B, N2, Cp), jnp.bfloat16),
                   jax.ShapeDtypeStruct((B, Cp, N2), jnp.bfloat16)),
        grid=(B,),
        in_specs=[pl.BlockSpec((1, 4, N2, C), lambda b: (b, 0, 0, 0)),
                  pl.BlockSpec((C, 2 * Cp), lambda b: (0, 0)),
                  pl.BlockSpec((1, 2 * Cp), lambda b: (0, 0))],
        out_specs=(pl.BlockSpec((1, N2, Cp), lambda b: (b, 0, 0)),
                   pl.BlockSpec((1, Cp, N2), lambda b: (b, 0, 0))),
        compiler_params=pltpu.CompilerParams(
            dimension_semantics=("parallel",),
            vmem_limit_bytes=build_vmem),
        cost_estimate=pl.CostEstimate(flops=build_flops, transcendentals=0,
                                      bytes_accessed=build_bytes),
    )(x4, pg_w, pg_b)

    # ---- call 2: main non-local kernel ---------------------------------------
    def const(shp):
        return pl.BlockSpec(shp, lambda b, j: (0,) * len(shp))

    main_flops = B * (2 * N * C * Cp           # theta conv
                      + 2 * N * N2 * Cp        # f = theta @ phi^T
                      + 2 * N * N2 * Cp        # y = e @ g
                      + 2 * N * Cp * C)        # W conv
    main_bytes = (x_flat.size * 4
                  + B * N * C * jnp.dtype(out_dtype).itemsize
                  + 2 * 2 * B * Cp * N2
                  + 2 * (th_w.size + w_w.size)
                  + 4 * (th_b.size + w_b.size + 2 * C))
    resident = 4 * Cp * N2 * 2                 # phi^T + g, double-buffered bf16
    main_est = (resident + 3 * per_tile_bytes(tile_n)
                + 2 * (th_w.size + w_w.size) + (2 << 20))
    main_vmem = min(int(vmem_cap * 0.9), max(32 * 1024 * 1024, main_est))

    out_flat = pl.pallas_call(
        _nonlocal_kernel,
        out_shape=jax.ShapeDtypeStruct((B, N, C), out_dtype),
        grid=(B, n_tiles),
        in_specs=[
            pl.BlockSpec((1, tile_n, C), lambda b, j: (b, j, 0)),   # x tile
            pl.BlockSpec((1, Cp, N2), lambda b, j: (b, 0, 0)),      # phi^T (per batch)
            pl.BlockSpec((1, N2, Cp), lambda b, j: (b, 0, 0)),      # g     (per batch)
            const((C, Cp)), const((1, Cp)),                         # theta w/b
            const((Cp, C)), const((1, C)),                          # W     w/b
            const((1, C)), const((1, C)),                           # bn scale/shift
        ],
        out_specs=pl.BlockSpec((1, tile_n, C), lambda b, j: (b, j, 0)),
        compiler_params=pltpu.CompilerParams(
            dimension_semantics=("parallel", "parallel"),           # no scratch carried
            vmem_limit_bytes=main_vmem),
        cost_estimate=pl.CostEstimate(flops=main_flops,
                                      transcendentals=B * N * N2,
                                      bytes_accessed=main_bytes),
    )(x_flat, phi_t, g_x, th_w, th_b, w_w, w_b, bn_scale, bn_shift)

    # back to NCHW
    return out_flat.reshape(B, H, W, C).transpose(0, 3, 1, 2)


# ---------- pure-JAX reference (mirrors the PyTorch forward, f32) ----------
def nonlocal_block_ref(x, params, eps=1e-5):
    B, C, H, W = x.shape
    Cp = params["theta_w"].shape[0]

    def conv1x1(inp, w, b):                                   # w: (O, I), b: (O,)
        return jnp.einsum("bchw,oc->bohw", inp, w) + b[None, :, None, None]

    def maxpool2(inp):
        b_, c_, h_, w_ = inp.shape
        return inp.reshape(b_, c_, h_ // 2, 2, w_ // 2, 2).max(axis=(3, 5))

    g_x = maxpool2(conv1x1(x, params["g_w"], params["g_b"]))
    g_x = g_x.reshape(B, Cp, -1).transpose(0, 2, 1)           # (B, N2, Cp)
    theta_x = conv1x1(x, params["theta_w"], params["theta_b"])
    theta_x = theta_x.reshape(B, Cp, -1).transpose(0, 2, 1)   # (B, N, Cp)
    phi_x = maxpool2(conv1x1(x, params["phi_w"], params["phi_b"]))
    phi_x = phi_x.reshape(B, Cp, -1)                          # (B, Cp, N2)

    f = jnp.matmul(theta_x, phi_x)                            # (B, N, N2)
    f_div_c = jax.nn.softmax(f, axis=-1)
    y = jnp.matmul(f_div_c, g_x)                              # (B, N, Cp)
    y = y.transpose(0, 2, 1).reshape(B, Cp, H, W)

    w_y = conv1x1(y, params["W_w"], params["W_b"])
    w_y = ((w_y - params["bn_mean"][None, :, None, None]) /
           jnp.sqrt(params["bn_var"] + eps)[None, :, None, None] *
           params["bn_gamma"][None, :, None, None] +
           params["bn_beta"][None, :, None, None])
    return w_y + x


if __name__ == "__main__":
    B, C, H, W = 2, 8, 16, 16
    Cp = C // 2

    key = jax.random.PRNGKey(0)
    keys = jax.random.split(key, 12)
    x = jax.random.normal(keys[0], (B, C, H, W), dtype=jnp.float32)

    params = {
        "theta_w": 0.1 * jax.random.normal(keys[1], (Cp, C), jnp.float32),
        "theta_b": 0.1 * jax.random.normal(keys[2], (Cp,), jnp.float32),
        "phi_w":   0.1 * jax.random.normal(keys[3], (Cp, C), jnp.float32),
        "phi_b":   0.1 * jax.random.normal(keys[4], (Cp,), jnp.float32),
        "g_w":     0.1 * jax.random.normal(keys[5], (Cp, C), jnp.float32),
        "g_b":     0.1 * jax.random.normal(keys[6], (Cp,), jnp.float32),
        "W_w":     0.1 * jax.random.normal(keys[7], (C, Cp), jnp.float32),
        "W_b":     0.1 * jax.random.normal(keys[8], (C,), jnp.float32),
        # module's __init__ sets these to 0 (zeroing the W branch); random here
        # so the kernel path is exercised.
        "bn_gamma": 0.1 * jax.random.normal(keys[9], (C,), jnp.float32),
        "bn_beta":  0.1 * jax.random.normal(keys[10], (C,), jnp.float32),
        "bn_mean":  jnp.zeros((C,), jnp.float32),
        "bn_var":   jnp.ones((C,), jnp.float32),
    }

    # max_tile_n=128 -> main grid (B, 2): exercises multi-tile + per-batch phi/g reuse.
    out = nonlocal_block_pallas(x, params, max_tile_n=128)
    out = jax.block_until_ready(out)

    ref = nonlocal_block_ref(x, params)
    assert out.shape == ref.shape == (B, C, H, W)
    # bf16 MXU operands + bf16 exp + approx reciprocal -> looser tolerance than f32.
    assert jnp.allclose(out, ref, atol=1e-2, rtol=1e-2), (
        float(jnp.max(jnp.abs(out - ref))))

    print("KERNEL_OK")
</pallas_src>

<mosaic_0001>
module attributes {stable_mosaic.version = 11 : i64} {
  func.func @_pooled_branch_kernel(%arg0: i32, %arg1: memref<1x4x64x8xbf16, #tpu.memory_space<vmem>>, %arg2: memref<8x8xbf16, #tpu.memory_space<vmem>>, %arg3: memref<1x8xf32, #tpu.memory_space<vmem>>, %arg4: memref<1x64x4xbf16, #tpu.memory_space<vmem>>, %arg5: memref<1x4x64xbf16, #tpu.memory_space<vmem>>) attributes {dimension_semantics = [#tpu.dimension_semantics<parallel>], iteration_bounds = array<i64: 2>, scalar_prefetch = 0 : i64, scratch_operands = 0 : i64, tpu.core_type = #tpu.core_type<tc>, window_params = [{transform_indices = @transform_0, window_bounds = array<i64: 1, 4, 64, 8>}, {pipeline_mode = #tpu.pipeline_mode<synchronous>, transform_indices = @transform_1, window_bounds = array<i64: 8, 8>}, {pipeline_mode = #tpu.pipeline_mode<synchronous>, transform_indices = @transform_2, window_bounds = array<i64: 1, 8>}, {transform_indices = @transform_3, window_bounds = array<i64: 1, 64, 4>}, {transform_indices = @transform_4, window_bounds = array<i64: 1, 4, 64>}]} {
    %c0 = arith.constant 0 : index
    %c0_0 = arith.constant 0 : index
    %0 = vector.load %arg2[%c0, %c0_0] : memref<8x8xbf16, #tpu.memory_space<vmem>>, vector<8x8xbf16>
    %c0_1 = arith.constant 0 : index
    %c0_2 = arith.constant 0 : index
    %c0_3 = arith.constant 0 : index
    %c0_4 = arith.constant 0 : index
    %1 = vector.load %arg1[%c0_1, %c0_2, %c0_3, %c0_4] : memref<1x4x64x8xbf16, #tpu.memory_space<vmem>>, vector<1x1x64x8xbf16>
    %2 = vector.shape_cast %1 : vector<1x1x64x8xbf16> to vector<64x8xbf16>
    %cst = arith.constant dense<0.000000e+00> : vector<64x8xf32>
    %3 = tpu.matmul %2, %0, %cst {dimension_numbers = #tpu.dot_dimension_numbers<[1], [0], [0], [1], [0, 0, 1, 1], [], []>} : vector<64x8xbf16>, vector<8x8xbf16>, vector<64x8xf32> -> vector<64x8xf32>
    %c0_5 = arith.constant 0 : index
    %c1 = arith.constant 1 : index
    %c0_6 = arith.constant 0 : index
    %c0_7 = arith.constant 0 : index
    %4 = vector.load %arg1[%c0_5, %c1, %c0_6, %c0_7] : memref<1x4x64x8xbf16, #tpu.memory_space<vmem>>, vector<1x1x64x8xbf16>
    %5 = vector.shape_cast %4 : vector<1x1x64x8xbf16> to vector<64x8xbf16>
    %cst_8 = arith.constant dense<0.000000e+00> : vector<64x8xf32>
    %6 = tpu.matmul %5, %0, %cst_8 {dimension_numbers = #tpu.dot_dimension_numbers<[1], [0], [0], [1], [0, 0, 1, 1], [], []>} : vector<64x8xbf16>, vector<8x8xbf16>, vector<64x8xf32> -> vector<64x8xf32>
    %7 = arith.maximumf %3, %6 : vector<64x8xf32>
    %c0_9 = arith.constant 0 : index
    %c2 = arith.constant 2 : index
    %c0_10 = arith.constant 0 : index
    %c0_11 = arith.constant 0 : index
    %8 = vector.load %arg1[%c0_9, %c2, %c0_10, %c0_11] : memref<1x4x64x8xbf16, #tpu.memory_space<vmem>>, vector<1x1x64x8xbf16>
    %9 = vector.shape_cast %8 : vector<1x1x64x8xbf16> to vector<64x8xbf16>
    %cst_12 = arith.constant dense<0.000000e+00> : vector<64x8xf32>
    %10 = tpu.matmul %9, %0, %cst_12 {dimension_numbers = #tpu.dot_dimension_numbers<[1], [0], [0], [1], [0, 0, 1, 1], [], []>} : vector<64x8xbf16>, vector<8x8xbf16>, vector<64x8xf32> -> vector<64x8xf32>
    %c0_13 = arith.constant 0 : index
    %c3 = arith.constant 3 : index
    %c0_14 = arith.constant 0 : index
    %c0_15 = arith.constant 0 : index
    %11 = vector.load %arg1[%c0_13, %c3, %c0_14, %c0_15] : memref<1x4x64x8xbf16, #tpu.memory_space<vmem>>, vector<1x1x64x8xbf16>
    %12 = vector.shape_cast %11 : vector<1x1x64x8xbf16> to vector<64x8xbf16>
    %cst_16 = arith.constant dense<0.000000e+00> : vector<64x8xf32>
    %13 = tpu.matmul %12, %0, %cst_16 {dimension_numbers = #tpu.dot_dimension_numbers<[1], [0], [0], [1], [0, 0, 1, 1], [], []>} : vector<64x8xbf16>, vector<8x8xbf16>, vector<64x8xf32> -> vector<64x8xf32>
    %14 = arith.maximumf %10, %13 : vector<64x8xf32>
    %15 = arith.maximumf %7, %14 : vector<64x8xf32>
    %c0_17 = arith.constant 0 : index
    %c0_18 = arith.constant 0 : index
    %16 = vector.load %arg3[%c0_17, %c0_18] : memref<1x8xf32, #tpu.memory_space<vmem>>, vector<1x8xf32>
    %17 = vector.broadcast %16 : vector<1x8xf32> to vector<64x8xf32>
    %18 = arith.addf %15, %17 : vector<64x8xf32>
    %19 = vector.extract_strided_slice %18 {offsets = [0, 0], sizes = [64, 4], strides = [1, 1]} : vector<64x8xf32> to vector<64x4xf32>
    %20 = arith.truncf %19 : vector<64x4xf32> to vector<64x4xbf16>
    %c0_19 = arith.constant 0 : index
    %c0_20 = arith.constant 0 : index
    %c0_21 = arith.constant 0 : index
    %21 = vector.load %arg4[%c0_19, %c0_20, %c0_21] : memref<1x64x4xbf16, #tpu.memory_space<vmem>>, vector<1x64x4xbf16>
    %22 = vector.shape_cast %21 : vector<1x64x4xbf16> to vector<64x4xbf16>
    %23 = vector.shape_cast %20 : vector<64x4xbf16> to vector<1x64x4xbf16>
    tpu.vector_store %arg4[%c0_19, %c0_20, %c0_21], %23 {strides = array<i32>} : memref<1x64x4xbf16, #tpu.memory_space<vmem>>, vector<1x64x4xbf16>,
    %24 = vector.extract_strided_slice %18 {offsets = [0, 4], sizes = [64, 4], strides = [1, 1]} : vector<64x8xf32> to vector<64x4xf32>
    %25 = tpu.transpose %24, [1, 0] : vector<64x4xf32> -> vector<4x64xf32>
    %26 = arith.truncf %25 : vector<4x64xf32> to vector<4x64xbf16>
    %c0_22 = arith.constant 0 : index
    %c0_23 = arith.constant 0 : index
    %c0_24 = arith.constant 0 : index
    %27 = vector.load %arg5[%c0_22, %c0_23, %c0_24] : memref<1x4x64xbf16, #tpu.memory_space<vmem>>, vector<1x4x64xbf16>
    %28 = vector.shape_cast %27 : vector<1x4x64xbf16> to vector<4x64xbf16>
    %29 = vector.shape_cast %26 : vector<4x64xbf16> to vector<1x4x64xbf16>
    tpu.vector_store %arg5[%c0_22, %c0_23, %c0_24], %29 {strides = array<i32>} : memref<1x4x64xbf16, #tpu.memory_space<vmem>>, vector<1x4x64xbf16>,
    return
  }
  func.func @transform_0(%arg0: i32) -> (i32, i32, i32, i32) {
    %c0_i32 = arith.constant 0 : i32
    %c0_i32_0 = arith.constant 0 : i32
    %c0_i32_1 = arith.constant 0 : i32
    %c0_i32_2 = arith.constant 0 : i32
    return %arg0, %c0_i32, %c0_i32_0, %c0_i32_1 : i32, i32, i32, i32
  }
  func.func @transform_1(%arg0: i32) -> (i32, i32) {
    %c0_i32 = arith.constant 0 : i32
    %c0_i32_0 = arith.constant 0 : i32
    %c0_i32_1 = arith.constant 0 : i32
    return %c0_i32, %c0_i32_0 : i32, i32
  }
  func.func @transform_2(%arg0: i32) -> (i32, i32) {
    %c0_i32 = arith.constant 0 : i32
    %c0_i32_0 = arith.constant 0 : i32
    %c0_i32_1 = arith.constant 0 : i32
    return %c0_i32, %c0_i32_0 : i32, i32
  }
  func.func @transform_3(%arg0: i32) -> (i32, i32, i32) {
    %c0_i32 = arith.constant 0 : i32
    %c0_i32_0 = arith.constant 0 : i32
    %c0_i32_1 = arith.constant 0 : i32
    return %arg0, %c0_i32, %c0_i32_0 : i32, i32, i32
  }
  func.func @transform_4(%arg0: i32) -> (i32, i32, i32) {
    %c0_i32 = arith.constant 0 : i32
    %c0_i32_0 = arith.constant 0 : i32
    %c0_i32_1 = arith.constant 0 : i32
    return %arg0, %c0_i32, %c0_i32_0 : i32, i32, i32
  }
}

</mosaic_0001>

<bundles_post_ra>
// kernel: tpu_custom_call.1
= control target key start
LH: loop header
LB: loop body
LE: loop exit
PB: predicated region body
PF: predicated region fallthrough
CT: control target
= control target key end

     0   :  { %10 = vsyncpa [#allocation3], 0  ;;  %s1140_s0 = inlined_call_operand.vmem [shape: bf16[2,4,64,8], index: 0, kind: input, shape index: {}]   ;;  %s1141_s1 = inlined_call_operand.vmem [shape: bf16[8,8], index: 1, kind: input, shape index: {}]   ;;  %s1142_s2 = inlined_call_operand.vmem [shape: f32[1,8], index: 2, kind: input, shape index: {}]   ;;  %s1143_s3 = inlined_call_operand.vmem [shape: bf16[2,64,4], index: 3, kind: output, shape index: {0}]   ;;  %s1144_s4 = inlined_call_operand.hbm [shape: bf16[2,4,64], index: 4, kind: output, shape index: {1}]  }
   0x1   :  { %12 = vsyncpa [#allocation3 + $0x1], 0  ;;  %s990_s15 = smov 0   ;;  %s992_s16 = smov 0  }
   0x2   :  { %s994_s17 = smov 0   ;;  %s996_s18 = smov 0  }
   0x3 LB: > { %s1011_s19 = sadd.s32 4294967295, %s962_s18   ;;  %s723_s20 = sadd.s32 4294967294, %s962_s18   ;;  %s962_s18 = sphi %s996_s18, %s1150_s18   ;;  %s958_s17 = sphi %s994_s17, %s1149_s17   ;;  %s954_s16 = sphi %s992_s16, %s1148_s16   ;;  %s950_s15 = sphi %s990_s15, %s1147_s15  }
   0x4   : > { %s1015_s21 = sadd.s32 1, %s962_s18   ;;  %s119_s22 = sadd.s32 1, %s958_s17 }
   0x5   : > { %s116_s23 = ssub.s32 %s962_s18, %s1015_s21  ;;  %p129_p0 = scmp.ne.s32.totalorder %s958_s17, %s954_s16 }
   0x6   : > { %p117_p1 = scmp.eq.s32.totalorder %s116_s23, 0  ;;  %p130_p2 = scmp.eq.s32.totalorder %s1011_s19, 1 }
   0x7   : > { %p135_p3 = scmp.ne.s32.totalorder %s954_s16, %s950_s15  ;;  %p136_p4 = scmp.eq.s32.totalorder %s723_s20, 1 }
   0x8   : > { %s1026_s24 = scalar_select %p117_p1, %s958_s17, %s119_s22  }
   0x9   : > { %p1028_p5 = por %p130_p2, %p129_p0  ;;  %p1032_p6 = por %p136_p4, %p135_p3 }
   0xa   : > { %p726_p7 = scmp.ge.s32.totalorder %s962_s18, 1  ;;  %p168_p8 = scmp.lt.s32.totalorder %s962_s18, 3 }
   0xc   : > { %p169_p9 = pnand %p726_p7, %p168_p8 }
   0xd   : > { %p199_p10 = scmp.lt.s32.totalorder (!%p169_p9), %s1011_s19, 1  ;;  %s964_s14 = smov (!%p169_p9), 124  }
   0xe   : > { %172 = sbr.rel (%p169_p9) target bundleno = 439 (0x1b7), region = 32  ;;  %s196_s20 = sand.u32 (!%p169_p9), 1, %s954_s16  }
   0xf   : > { %s727_s22 = sshll.u32 (!%p169_p9), %s196_s20, 1  ;;  %s837_s23 = sshll.u32 (!%p169_p9), %s1011_s19, 1 }
  0x10   : > { %s920_s11 = scalar_lea.hbm (!%p169_p9), %s1144_s4, 4 }
  0x13   : > { %v210_v0 = vld [vmem:[%s1141_s1] sm:$0xf]  ;;  %vm252_vm0 = vcmask 1043456   ;;  %s1043_s29 = scalar_select %p199_p10, %s1011_s19, 1  ;;  %vm239_vm1 = vcmask 64512   ;;  %vm539_vm2 = vcmask 27648  }
  0x14   : > { %v254_v1 = vsel %vm252_vm0, %v210_v0, 0  ;;  %v1068_v26 = vld [vmem:[%s1142_s2] ss:$0 sm:$0xff]  ;;  %vm613_vm3 = vcmask 517120  }
  0x15   : > { %263 = vmatpush.bf16.msra.mxu0 %v254_v1  ;;  %333 = vmatpush.bf16.msra.mxu1 %v254_v1  ;;  %s840_s30 = sshll.u32 %s1043_s29, 7  ;;  %s841_s10 = sshll.u32 %s1043_s29, 5 }
  0x16   : > { %411 = vmatpush.bf16.msra.mxu2 %v254_v1  ;;  %481 = vmatpush.bf16.msra.mxu3 %v254_v1  ;;  %s203_s7 = scalar_lea.vmem %s1140_s0, %s840_s30  ;;  %s1075_s13 = scalar_lea.vmem %s1143_s3, %s841_s10 }
  0x17   : > { %v842_v2 = vld [vmem:[%s203_s7] sm:$0xff]  ;;  %v843_v6 = vld [vmem:[%s203_s7 + $0x8] sm:$0xff]  ;;  %v844_v10 = vld [vmem:[%s203_s7 + $0x10] sm:$0xff]  ;;  %s634_s29 = scalar_lea.hbm %s1144_s4, %s837_s23  ;;  %s198_s30 = scalar_lea.vmem [#allocation2], %s727_s22 }
  0x18   : > { %v846_v3 = vld [vmem:[%s203_s7 + $0x20] sm:$0xff]  ;;  %748 = vmatmul.msk.bf16.vlgmr.msra.gmra.mxu0 %vm239_vm1, %v842_v2  ;;  %v847_v7 = vld [vmem:[%s203_s7 + $0x28] sm:$0xff]  ;;  %v848_v11 = vld [vmem:[%s203_s7 + $0x30] sm:$0xff]  ;;  %s636_s5 = sshll.u32 %s198_s30, 4  ;;  %s638_s6 = sshll.u32 %s634_s29, 4  ;;  %s637_s5 = int_to_ptr.vmem [resolvable:$true] %s636_s5  ;;  %s639_s6 = int_to_ptr.hbm [resolvable:$true] %s638_s6 }
  0x19   : > { %v850_v4 = vld [vmem:[%s203_s7 + $0x40] sm:$0xff]  ;;  %776 = vmatmul.msk.bf16.vlgmr.msra.gmra.mxu1 %vm239_vm1, %v846_v3  ;;  %v851_v8 = vld [vmem:[%s203_s7 + $0x48] sm:$0xff]  ;;  %v852_v12 = vld [vmem:[%s203_s7 + $0x50] sm:$0xff]  ;;  %s914_s8 = sshra.s32 %s639_s6, 4  ;;  %s915_s8 = int_to_ptr.hbm [resolvable:$true] %s914_s8 }
  0x1a   : > { %v854_v5 = vld [vmem:[%s203_s7 + $0x60] sm:$0xff]  ;;  %804 = vmatmul.msk.bf16.vlgmr.msra.gmra.mxu2 %vm239_vm1, %v850_v4  ;;  %v855_v9 = vld [vmem:[%s203_s7 + $0x68] sm:$0xff]  ;;  %v856_v13 = vld [vmem:[%s203_s7 + $0x70] sm:$0xff]  ;;  %s916_s9 = scalar_lea.hbm %s915_s8, 2  ;;  %p921_p0 = scmp.lt.s32.totalorder %s915_s8, %s1144_s4 }
  0x1b   : > { %832 = vmatmul.msk.bf16.vlgmr.msra.gmra.mxu3 %vm239_vm1, %v854_v5  ;;  %v845_v14 = vld [vmem:[%s203_s7 + $0x18] sm:$0xff]  ;;  %p917_p11 = scmp.ne.s32.totalorder %s915_s8, %s916_s9  ;;  %p922_p1 = scmp.lt.s32.totalorder %s920_s11, %s916_s9 }
  0x1c   : > { %v849_v15 = vld [vmem:[%s203_s7 + $0x38] sm:$0xff] }
  0x1d   : > { %v853_v16 = vld [vmem:[%s203_s7 + $0x58] sm:$0xff]  ;;  %p918_p12 = pnand %p917_p11, %p1028_p5  ;;  %p923_p2 = por %p922_p1, %p921_p0 }
  0x1e   : > { %v857_v17 = vld [vmem:[%s203_s7 + $0x78] sm:$0xff]  ;;  %s621_s7 = scalar_lea.sflag [#allocation3], %s196_s20 }
  0x1f   : > { %p919_p13 = pneg %p918_p12 }
  0x21   : > { %p924_p3 = pnand %p923_p2, %p919_p13 }
  0x28   : > { %749 = vmatmul.msk.bf16.gmra.mxu0 %vm239_vm1, %v843_v6 }
  0x29   : > { %777 = vmatmul.msk.bf16.gmra.mxu1 %vm239_vm1, %v847_v7 }
  0x2a   : > { %805 = vmatmul.msk.bf16.gmra.mxu2 %vm239_vm1, %v851_v8 }
  0x2b   : > { %833 = vmatmul.msk.bf16.gmra.mxu3 %vm239_vm1, %v855_v9 }
  0x38   : > { %750 = vmatmul.msk.bf16.gmra.mxu0 %vm239_vm1, %v844_v10 }
  0x39   : > { %778 = vmatmul.msk.bf16.gmra.mxu1 %vm239_vm1, %v848_v11 }
  0x3a   : > { %806 = vmatmul.msk.bf16.gmra.mxu2 %vm239_vm1, %v852_v12 }
  0x3b   : > { %834 = vmatmul.msk.bf16.gmra.mxu3 %vm239_vm1, %v856_v13 }
  0x48   : > { %751 = vmatmul.msk.bf16.gmra.mxu0 %vm239_vm1, %v845_v14 }
  0x49   : > { %779 = vmatmul.msk.bf16.gmra.mxu1 %vm239_vm1, %v849_v15 }
  0x4a   : > { %807 = vmatmul.msk.bf16.gmra.mxu2 %vm239_vm1, %v853_v16 }
  0x4b   : > { %835 = vmatmul.msk.bf16.gmra.mxu3 %vm239_vm1, %v857_v17 }
  0x95   : > { %v265_v18 = vpop.f32.mrf.mxu0 }
  0x96   : > { %v335_v19 = vpop.f32.mrf.mxu1 }
  0x97   : > { %v355_v20 = vmax.f32 %v265_v18, %v335_v19 }
  0x9d   : > { %v413_v21 = vpop.f32.mrf.mxu2  ;;  %v267_v24 = vpop.f32.mrf.mxu0 }
  0x9e   : > { %v483_v22 = vpop.f32.mrf.mxu3  ;;  %v337_v25 = vpop.f32.mrf.mxu1 }
  0x9f   : > { %v503_v23 = vmax.f32 %v413_v21, %v483_v22  ;;  %v356_v32 = vmax.f32 %v267_v24, %v337_v25 }
  0xa1   : > { %v511_v27 = vmax.f32 %v355_v20, %v503_v23 }
  0xa3   : > { %v523_v28 = vadd.f32 %v1068_v26, %v511_v27 }
  0xa5   : > { %556 = vrot.lane.b32.xlu0 %v523_v28, %s964_s14  ;;  %v531_v29 = vpack.c.bf16 %v523_v28, %v523_v28  ;;  %v415_v30 = vpop.f32.mrf.mxu2  ;;  %v270_v34 = vpop.f32.mrf.mxu0 }
  0xa6   : > { %v485_v31 = vpop.f32.mrf.mxu3  ;;  %v340_v35 = vpop.f32.mrf.mxu1 }
  0xa7   : > { %540 = vst.msk [vmem:[%s1075_s13] sm:$0xf] %vm539_vm2, %v531_v29  ;;  %v504_v33 = vmax.f32 %v415_v30, %v485_v31  ;;  %v357_v38 = vmax.f32 %v270_v34, %v340_v35 }
  0xa9   : > { %v512_v36 = vmax.f32 %v356_v32, %v504_v33 }
  0xab   : > { %v524_v37 = vadd.f32 %v1068_v26, %v512_v36 }
  0xad   : > { %558 = vrot.lane.b32.xlu0 %v524_v37, %s964_s14  ;;  %v532_v39 = vpack.c.bf16 %v524_v37, %v524_v37  ;;  %v418_v40 = vpop.f32.mrf.mxu2  ;;  %v272_v43 = vpop.f32.mrf.mxu0 }
  0xae   : > { %v488_v41 = vpop.f32.mrf.mxu3  ;;  %v342_v44 = vpop.f32.mrf.mxu1 }
  0xaf   : > { %541 = vst.msk [vmem:[%s1075_s13 + $0x4] sm:$0xf] %vm539_vm2, %v532_v39  ;;  %v505_v42 = vmax.f32 %v418_v40, %v488_v41  ;;  %v358_v50 = vmax.f32 %v272_v43, %v342_v44 }
  0xb1   : > { %v513_v45 = vmax.f32 %v357_v38, %v505_v42 }
  0xb3   : > { %v525_v46 = vadd.f32 %v1068_v26, %v513_v45 }
  0xb5   : > { %560 = vrot.lane.b32.xlu1 %v525_v46, %s964_s14  ;;  %v533_v47 = vpack.c.bf16 %v525_v46, %v525_v46  ;;  %v420_v48 = vpop.f32.mrf.mxu2  ;;  %v275_v52 = vpop.f32.mrf.mxu0 }
  0xb6   : > { %v490_v49 = vpop.f32.mrf.mxu3  ;;  %v345_v53 = vpop.f32.mrf.mxu1 }
  0xb7   : > { %542 = vst.msk [vmem:[%s1075_s13 + $0x8] sm:$0xf] %vm539_vm2, %v533_v47  ;;  %v506_v51 = vmax.f32 %v420_v48, %v490_v49  ;;  %v359_v56 = vmax.f32 %v275_v52, %v345_v53 }
  0xb9   : > { %v514_v54 = vmax.f32 %v358_v50, %v506_v51 }
  0xbb   : > { %v526_v55 = vadd.f32 %v1068_v26, %v514_v54 }
  0xbd   : > { %562 = vrot.lane.b32.xlu1 %v526_v55, %s964_s14  ;;  %v534_v57 = vpack.c.bf16 %v526_v55, %v526_v55  ;;  %v423_v58 = vpop.f32.mrf.mxu2  ;;  %v277_v61 = vpop.f32.mrf.mxu0 }
  0xbe   : > { %v493_v59 = vpop.f32.mrf.mxu3  ;;  %v347_v62 = vpop.f32.mrf.mxu1 }
  0xbf   : > { %543 = vst.msk [vmem:[%s1075_s13 + $0xc] sm:$0xf] %vm539_vm2, %v534_v57  ;;  %v507_v60 = vmax.f32 %v423_v58, %v493_v59  ;;  %v360_v4 = vmax.f32 %v277_v61, %v347_v62 }
  0xc1   : > { %v515_v63 = vmax.f32 %v359_v56, %v507_v60 }
  0xc3   : > { %v527_v0 = vadd.f32 %v1068_v26, %v515_v63 }
  0xc5   : > { %564 = vrot.lane.b32.xlu2 %v527_v0, %s964_s14  ;;  %v535_v1 = vpack.c.bf16 %v527_v0, %v527_v0  ;;  %v425_v2 = vpop.f32.mrf.mxu2  ;;  %v280_v7 = vpop.f32.mrf.mxu0 }
  0xc6   : > { %v495_v3 = vpop.f32.mrf.mxu3  ;;  %v350_v8 = vpop.f32.mrf.mxu1 }
  0xc7   : > { %544 = vst.msk [vmem:[%s1075_s13 + $0x10] sm:$0xf] %vm539_vm2, %v535_v1  ;;  %v508_v5 = vmax.f32 %v425_v2, %v495_v3  ;;  %v361_v10 = vmax.f32 %v280_v7, %v350_v8 }
  0xc9   : > { %v516_v6 = vmax.f32 %v360_v4, %v508_v5 }
  0xcb   : > { %v528_v9 = vadd.f32 %v1068_v26, %v516_v6 }
  0xcd   : > { %566 = vrot.lane.b32.xlu2 %v528_v9, %s964_s14  ;;  %v536_v11 = vpack.c.bf16 %v528_v9, %v528_v9  ;;  %v428_v12 = vpop.f32.mrf.mxu2  ;;  %v282_v17 = vpop.f32.mrf.mxu0 }
  0xce   : > { %v498_v13 = vpop.f32.mrf.mxu3  ;;  %v352_v18 = vpop.f32.mrf.mxu1 }
  0xcf   : > { %545 = vst.msk [vmem:[%s1075_s13 + $0x14] sm:$0xf] %vm539_vm2, %v536_v11  ;;  %v509_v14 = vmax.f32 %v428_v12, %v498_v13  ;;  %v362_v22 = vmax.f32 %v282_v17, %v352_v18 }
  0xd1   : > { %v517_v15 = vmax.f32 %v361_v10, %v509_v14 }
  0xd3   : > { %v529_v16 = vadd.f32 %v1068_v26, %v517_v15 }
  0xd5   : > { %568 = vrot.lane.b32.xlu0 %v529_v16, %s964_s14  ;;  %v537_v19 = vpack.c.bf16 %v529_v16, %v529_v16  ;;  %v430_v20 = vpop.f32.mrf.mxu2 }
  0xd6   : > { %v500_v21 = vpop.f32.mrf.mxu3 }
  0xd7   : > { %546 = vst.msk [vmem:[%s1075_s13 + $0x18] sm:$0xf] %vm539_vm2, %v537_v19  ;;  %v510_v23 = vmax.f32 %v430_v20, %v500_v21 }
  0xd9   : > { %v518_v24 = vmax.f32 %v362_v22, %v510_v23 }
  0xdb   : > { %v530_v25 = vadd.f32 %v1068_v26, %v518_v24 }
  0xdd   : > { %570 = vrot.lane.b32.xlu1 %v530_v25, %s964_s14  ;;  %v538_v27 = vpack.c.bf16 %v530_v25, %v530_v25 }
  0xdf   : > { %547 = vst.msk [vmem:[%s1075_s13 + $0x1c] sm:$0xf] %vm539_vm2, %v538_v27 }
 0x117   : > { %v557_v28 = vpop.permute.xlu0 %556 }
 0x118   : > { %580 = vxpose.xlu2.b32.start [1/8] (short) (narrow) %v557_v28, 8 }
 0x11f   : > { %v559_v29 = vpop.permute.xlu0 %558  ;;  %v565_v32 = vpop.permute.xlu2 %564 }
 0x120   : > { %581 = vxpose.xlu2.b32.cont [2/8] (short) (narrow) %v559_v29, 8 }
 0x127   : > { %v561_v30 = vpop.permute.xlu1 %560  ;;  %v567_v33 = vpop.permute.xlu2 %566 }
 0x128   : > { %582 = vxpose.xlu2.b32.cont [3/8] (short) (narrow) %v561_v30, 8 }
 0x12f   : > { %v563_v31 = vpop.permute.xlu1 %562 }
 0x130   : > { %583 = vxpose.xlu2.b32.cont [4/8] (short) (narrow) %v563_v31, 8 }
 0x138   : > { %584 = vxpose.xlu2.b32.cont [5/8] (short) (narrow) %v565_v32, 8 }
 0x140   : > { %585 = vxpose.xlu2.b32.cont [6/8] (short) (narrow) %v567_v33, 8 }
 0x147   : > { %v569_v26 = vpop.permute.xlu0 %568 }
 0x148   : > { %586 = vxpose.xlu2.b32.cont [7/8] (short) (narrow) %v569_v26, 8 }
 0x14f   : > { %v571_v34 = vpop.permute.xlu1 %570 }
 0x150   : > { %587 = vxpose.xlu2.b32.end [8/8] (short) (narrow) %v571_v34, 8 }
 0x1b1   : > { %v596_v35 = vpop.trf.xlu2 }
 0x1b2   : > { %v612_v36 = vpack.c.bf16 %v596_v35, %v596_v35 }
 0x1b4   : > { %614 = vst.msk [vmem:[%s198_s30] sm:$0x3] %vm613_vm3, %v612_v36 }
 0x1b5   : > { %927 = shalt.err (!%p924_p3)
}
 0x1b6   : > { %858 = dma.vmem_to_hbm [thread:$0]  (%p1028_p5), %s637_s5, 32, %s639_s6, %s621_s7  }
 0x1b7 PF: > { %p864_p4 = scmp.ge.s32.totalorder %s962_s18, 2  ;;  %s658_s14 = sand.u32 1, %s950_s15  }
 0x1b8   : > { %s659_s20 = scalar_lea.sflag [#allocation3], %s658_s14 }
 0x1b9   : > { %p861_p7 = pnand %p864_p4, %p1032_p6 }
 0x1bb   : > { %p862_p8 = pneg %p861_p7 }
 0x1bd   : > { %945 = dma.done.wait (%p862_p8), %s659_s20, 32  }
 0x1be   : > { %947 = vsyncadd (%p862_p8), %s659_s20, 4294967264  ;;  %p15_p9 = scmp.ge.s32.totalorder %s1015_s21, 4   ;;  %s1147_s15 = smov %s954_s16 }
 0x1bf   : > { %s1148_s16 = smov %s958_s17  ;;  %s1149_s17 = smov %s1026_s24 }
 0x1c0   : > { %s1150_s18 = smov %s1015_s21  ;;  %17 = sbr.rel (!%p15_p9) target bundleno = 3 (0x3), region = 82 }
 0x1c5   :  { %665 = vsyncpa [#allocation3], 1 }
 0x1c6   :  { %667 = vsyncpa [#allocation3 + $0x1], 1 }

</bundles_post_ra>
